<compile_context>
chip_gen: v6e
topology: v6e:2x2x1
jax: 0.10.0
libtpu: 0.0.40
codegen_flags: <defaults>
</compile_context>

<pallas_src>
import functools

import jax
import jax.numpy as jnp
from jax.experimental import pallas as pl
from jax.experimental.pallas import tpu as pltpu


def _round_up(x, m):
    return pl.cdiv(x, m) * m


def _ce_kernel(pred_ref, tgt_ref, sum_ref, cnt_ref, *,
               num_classes, ignore_index, label_smoothing):
    """One (head, row-tile) grid step of label-smoothed CE with ignore_index.

    pred_ref: (TN, C)   logits tile for the current head (any float dtype)
    tgt_ref:  (TN, 1)   int32 targets tile (shared by all heads)
    sum_ref:  (8, 128)  f32 per-head accumulator (sum of losses, broadcast-filled)
    cnt_ref:  (8, 128)  f32 per-head accumulator (# of non-ignored rows)
    """
    @pl.when(pl.program_id(1) == 0)
    def _():
        sum_ref[...] = jnp.zeros_like(sum_ref)
        cnt_ref[...] = jnp.zeros_like(cnt_ref)

    x = pred_ref[...].astype(jnp.float32)                         # (TN, C)
    t = tgt_ref[...]                                              # (TN, 1) int32

    # Row-wise log-softmax pieces; reuse lse instead of materializing logp
    # and reducing it twice.
    m = jnp.max(x, axis=-1, keepdims=True)
    z = x - m
    lse = jnp.log(jnp.sum(jnp.exp(z), axis=-1, keepdims=True))    # (TN, 1)

    cls = jax.lax.broadcasted_iota(jnp.int32, x.shape, 1)
    onehot = (cls == t).astype(jnp.float32)                       # (TN, C)
    z_t = jnp.sum(onehot * z, axis=-1, keepdims=True)             # z[target]
    z_sum = jnp.sum(z, axis=-1, keepdims=True)

    nll = lse - z_t                                               # -logp[target]
    smooth = lse - z_sum * (1.0 / num_classes)                    # -mean(logp)
    per_row = (1.0 - label_smoothing) * nll + label_smoothing * smooth

    # ignore_index = C + 1, matching F.cross_entropy(..., ignore_index=pred.shape[1]+1).
    valid = (t != ignore_index).astype(jnp.float32)               # (TN, 1)
    per_row = per_row * valid

    tile_sum = jnp.sum(per_row, axis=0, keepdims=True)            # (1, 1)
    tile_cnt = jnp.sum(valid, axis=0, keepdims=True)              # (1, 1)

    sum_ref[...] += jnp.broadcast_to(tile_sum, sum_ref.shape)
    cnt_ref[...] += jnp.broadcast_to(tile_cnt, cnt_ref.shape)


def lpv_loss(preds, batch, label_smoothing=0.0):
    """JAX/Pallas equivalent of LPVLoss.forward.

    preds: list of arrays [B, L, C] with L == max(lengths) + 1 (LPV convention)
    batch: (images_or_any, labels[B, T] int, lengths[B] int)
    """
    labels = batch[1]
    num_heads = len(preds)
    B, L, C = preds[0].shape
    ignore_index = C + 1

    # Original: tgt = labels[:, 1:2 + lengths.max()].  In LPV, pred.shape[1] ==
    # max_len + 1, so we slice statically from L and avoid a host sync /
    # shape-dependent recompiles.
    assert labels.shape[1] >= 1 + L, "labels too short for prediction length"
    tgt = labels[:, 1:1 + L].astype(jnp.int32).reshape(-1)        # (N,)
    N = B * L

    # Stack heads: (num_heads, N, C), keep native dtype (cast happens in-kernel).
    pred_stack = jnp.stack([p.reshape(N, C) for p in preds], axis=0)

    # Tile sizing: overhead-bound kernel -> use the full padded N when small,
    # otherwise large tiles, capped so one input buffer stays well under VMEM
    # budgets on every generation (v7x has half the VMEM of v5e/v6e).
    itemsize = jnp.dtype(pred_stack.dtype).itemsize
    row_mult = 8 if itemsize >= 4 else (16 if itemsize == 2 else 32)
    rows_budget = max(row_mult, (8 * 1024 * 1024) // max(C * itemsize, 1))
    rows_budget = max(row_mult, (rows_budget // row_mult) * row_mult)
    tile_n = min(_round_up(N, row_mult), 1024, rows_budget)

    n_pad = _round_up(N, tile_n)
    if n_pad != N:
        # Padding rows get target == ignore_index -> contribute nothing.
        pred_stack = jnp.pad(pred_stack, ((0, 0), (0, n_pad - N), (0, 0)))
        tgt = jnp.pad(tgt, (0, n_pad - N), constant_values=ignore_index)
    tgt2d = tgt.reshape(n_pad, 1)

    kernel = functools.partial(
        _ce_kernel,
        num_classes=C,
        ignore_index=ignore_index,
        label_smoothing=float(label_smoothing),
    )

    sums, cnts = pl.pallas_call(
        kernel,
        out_shape=(
            jax.ShapeDtypeStruct((num_heads, 8, 128), jnp.float32),
            jax.ShapeDtypeStruct((num_heads, 8, 128), jnp.float32),
        ),
        grid_spec=pltpu.PrefetchScalarGridSpec(
            num_scalar_prefetch=0,
            grid=(num_heads, n_pad // tile_n),
            in_specs=[
                pl.BlockSpec((None, tile_n, C), lambda p, i: (p, i, 0)),
                pl.BlockSpec((tile_n, 1), lambda p, i: (i, 0)),
            ],
            out_specs=[
                pl.BlockSpec((None, 8, 128), lambda p, i: (p, 0, 0)),
                pl.BlockSpec((None, 8, 128), lambda p, i: (p, 0, 0)),
            ],
        ),
        compiler_params=pltpu.CompilerParams(
            dimension_semantics=("parallel", "arbitrary"),
            vmem_limit_bytes=32 * 1024 * 1024,
        ),
    )(pred_stack, tgt2d)

    # NOTE: if every target is ignore_index, count == 0 and the mean is NaN,
    # which matches torch.nn.functional.cross_entropy(reduction='mean').
    loss_dict = {}
    total = jnp.float32(0.0)
    for i in range(num_heads):
        loss_i = sums[i, 0, 0] / cnts[i, 0, 0]
        total = total + loss_i
        loss_dict["loss" + str(i)] = loss_i
    loss_dict["loss"] = total
    return loss_dict


def _ref_lpv_loss(preds, labels, label_smoothing):
    """Pure-JAX reference mirroring the PyTorch module (for sanity checking)."""
    B, L, C = preds[0].shape
    ignore = C + 1
    tgt = labels[:, 1:1 + L].reshape(-1)
    valid = (tgt != ignore)
    loss_dict = {}
    total = jnp.float32(0.0)
    for i, p in enumerate(preds):
        logits = p.reshape(-1, C).astype(jnp.float32)
        logp = jax.nn.log_softmax(logits, axis=-1)
        onehot = (jnp.arange(C)[None, :] == tgt[:, None]).astype(jnp.float32)
        nll = -jnp.sum(onehot * logp, axis=-1)
        smooth = -jnp.mean(logp, axis=-1)
        per = (1.0 - label_smoothing) * nll + label_smoothing * smooth
        li = jnp.sum(jnp.where(valid, per, 0.0)) / jnp.sum(valid)
        total = total + li
        loss_dict["loss" + str(i)] = li
    loss_dict["loss"] = total
    return loss_dict


if __name__ == "__main__":
    key = jax.random.PRNGKey(0)
    B = 2
    T_LAB = 12          # label sequence length (incl. BOS)
    C = 37              # number of classes
    N_PREDS = 3         # LPV-style iterative refinement produces a list of preds
    LABEL_SMOOTHING = 0.1

    k_lab, *k_preds = jax.random.split(key, 1 + N_PREDS)

    lengths = jnp.array([5, 7], dtype=jnp.int32)      # max_len = 7
    max_len = 7                                       # static (== lengths.max())
    L = max_len + 1                                   # target / pred seq length

    labels = jax.random.randint(k_lab, (B, T_LAB), 0, C, dtype=jnp.int32)
    # pad positions beyond each sample's length with ignore_index = C + 1
    pos = jnp.arange(T_LAB)[None, :]
    labels = jnp.where(pos > (lengths[:, None] + 1), C + 1, labels)

    preds = [
        jax.random.normal(k_preds[i], (B, L, C), dtype=jnp.float32)
        for i in range(N_PREDS)
    ]

    out = lpv_loss(preds, (None, labels, lengths), label_smoothing=LABEL_SMOOTHING)
    out = jax.tree_util.tree_map(jax.block_until_ready, out)

    # sanity: matches a pure-JAX cross-entropy reference, and total == sum of parts
    ref = _ref_lpv_loss(preds, labels, LABEL_SMOOTHING)
    for k in ref:
        assert abs(float(out[k]) - float(ref[k])) < 1e-3, (k, float(out[k]), float(ref[k]))
    total = float(out["loss"])
    parts = sum(float(out["loss" + str(i)]) for i in range(N_PREDS))
    assert abs(total - parts) < 1e-4 and total == total  # not NaN

    print("KERNEL_OK")
</pallas_src>

<mosaic_0001>
module attributes {stable_mosaic.version = 11 : i64} {
  func.func @_ce_kernel(%arg0: i32, %arg1: i32, %arg2: memref<1x16x37xf32, #tpu.memory_space<vmem>>, %arg3: memref<16x1xi32, #tpu.memory_space<vmem>>, %arg4: memref<1x8x128xf32, #tpu.memory_space<vmem>>, %arg5: memref<1x8x128xf32, #tpu.memory_space<vmem>>) attributes {dimension_semantics = [#tpu.dimension_semantics<parallel>, #tpu.dimension_semantics<arbitrary>], iteration_bounds = array<i64: 3, 1>, scalar_prefetch = 0 : i64, scratch_operands = 0 : i64, tpu.core_type = #tpu.core_type<tc>, window_params = [{transform_indices = @transform_0, window_bounds = array<i64: 1, 16, 37>}, {transform_indices = @transform_1, window_bounds = array<i64: 16, 1>}, {transform_indices = @transform_2, window_bounds = array<i64: 1, 8, 128>}, {transform_indices = @transform_3, window_bounds = array<i64: 1, 8, 128>}]} {
    %c0_i32 = arith.constant 0 : i32
    %0 = arith.cmpi eq, %arg1, %c0_i32 : i32
    %1 = arith.extui %0 : i1 to i32
    %c0_i32_0 = arith.constant 0 : i32
    %2 = arith.cmpi ne, %1, %c0_i32_0 : i32
    scf.if %2 {
      %cst_25 = arith.constant 0.000000e+00 : f32
      %58 = vector.broadcast %cst_25 : f32 to vector<8x128xf32>
      %c0_26 = arith.constant 0 : index
      %c0_27 = arith.constant 0 : index
      %c0_28 = arith.constant 0 : index
      %59 = vector.load %arg4[%c0_26, %c0_27, %c0_28] : memref<1x8x128xf32, #tpu.memory_space<vmem>>, vector<1x8x128xf32>
      %60 = vector.shape_cast %59 : vector<1x8x128xf32> to vector<8x128xf32>
      %61 = vector.shape_cast %58 : vector<8x128xf32> to vector<1x8x128xf32>
      tpu.vector_store %arg4[%c0_26, %c0_27, %c0_28], %61 {strides = array<i32>} : memref<1x8x128xf32, #tpu.memory_space<vmem>>, vector<1x8x128xf32>,
      %cst_29 = arith.constant 0.000000e+00 : f32
      %62 = vector.broadcast %cst_29 : f32 to vector<8x128xf32>
      %c0_30 = arith.constant 0 : index
      %c0_31 = arith.constant 0 : index
      %c0_32 = arith.constant 0 : index
      %63 = vector.load %arg5[%c0_30, %c0_31, %c0_32] : memref<1x8x128xf32, #tpu.memory_space<vmem>>, vector<1x8x128xf32>
      %64 = vector.shape_cast %63 : vector<1x8x128xf32> to vector<8x128xf32>
      %65 = vector.shape_cast %62 : vector<8x128xf32> to vector<1x8x128xf32>
      tpu.vector_store %arg5[%c0_30, %c0_31, %c0_32], %65 {strides = array<i32>} : memref<1x8x128xf32, #tpu.memory_space<vmem>>, vector<1x8x128xf32>,
    } else {
    }
    %c0 = arith.constant 0 : index
    %c0_1 = arith.constant 0 : index
    %c0_2 = arith.constant 0 : index
    %3 = vector.load %arg2[%c0, %c0_1, %c0_2] : memref<1x16x37xf32, #tpu.memory_space<vmem>>, vector<1x16x37xf32>
    %4 = vector.shape_cast %3 : vector<1x16x37xf32> to vector<16x37xf32>
    %c0_3 = arith.constant 0 : index
    %c0_4 = arith.constant 0 : index
    %5 = vector.load %arg3[%c0_3, %c0_4] : memref<16x1xi32, #tpu.memory_space<vmem>>, vector<16x1xi32>
    %cst = arith.constant dense<0xFF800000> : vector<16xf32>
    %6 = vector.multi_reduction <maximumf>, %4, %cst [1] : vector<16x37xf32> to vector<16xf32>
    %7 = vector.shape_cast %6 : vector<16xf32> to vector<16x1xf32>
    %8 = vector.broadcast %7 : vector<16x1xf32> to vector<16x37xf32>
    %9 = arith.subf %4, %8 : vector<16x37xf32>
    %10 = math.exp %9 : vector<16x37xf32>
    %cst_5 = arith.constant dense<0.000000e+00> : vector<16xf32>
    %11 = vector.multi_reduction <add>, %10, %cst_5 [1] : vector<16x37xf32> to vector<16xf32>
    %12 = vector.shape_cast %11 : vector<16xf32> to vector<16x1xf32>
    %13 = math.log %12 : vector<16x1xf32>
    %14 = tpu.iota {dimensions = array<i32: 1>} : vector<16x37xi32>
    %15 = vector.broadcast %5 : vector<16x1xi32> to vector<16x37xi32>
    %16 = arith.cmpi eq, %14, %15 : vector<16x37xi32>
    %17 = arith.extui %16 : vector<16x37xi1> to vector<16x37xi32>
    %18 = arith.sitofp %17 : vector<16x37xi32> to vector<16x37xf32>
    %19 = arith.mulf %18, %9 : vector<16x37xf32>
    %cst_6 = arith.constant dense<0.000000e+00> : vector<16xf32>
    %20 = vector.multi_reduction <add>, %19, %cst_6 [1] : vector<16x37xf32> to vector<16xf32>
    %21 = vector.shape_cast %20 : vector<16xf32> to vector<16x1xf32>
    %cst_7 = arith.constant dense<0.000000e+00> : vector<16xf32>
    %22 = vector.multi_reduction <add>, %9, %cst_7 [1] : vector<16x37xf32> to vector<16xf32>
    %23 = vector.shape_cast %22 : vector<16xf32> to vector<16x1xf32>
    %24 = arith.subf %13, %21 : vector<16x1xf32>
    %cst_8 = arith.constant 0.0270270277 : f32
    %25 = vector.broadcast %cst_8 : f32 to vector<16x1xf32>
    %26 = arith.mulf %23, %25 : vector<16x1xf32>
    %27 = arith.subf %13, %26 : vector<16x1xf32>
    %cst_9 = arith.constant 0.899999976 : f32
    %28 = vector.broadcast %cst_9 : f32 to vector<16x1xf32>
    %29 = arith.mulf %28, %24 : vector<16x1xf32>
    %cst_10 = arith.constant 1.000000e-01 : f32
    %30 = vector.broadcast %cst_10 : f32 to vector<16x1xf32>
    %31 = arith.mulf %30, %27 : vector<16x1xf32>
    %32 = arith.addf %29, %31 : vector<16x1xf32>
    %c38_i32 = arith.constant 38 : i32
    %33 = vector.broadcast %c38_i32 : i32 to vector<16x1xi32>
    %34 = arith.cmpi ne, %5, %33 : vector<16x1xi32>
    %35 = arith.extui %34 : vector<16x1xi1> to vector<16x1xi32>
    %36 = arith.sitofp %35 : vector<16x1xi32> to vector<16x1xf32>
    %37 = arith.mulf %32, %36 : vector<16x1xf32>
    %cst_11 = arith.constant dense<0.000000e+00> : vector<1xf32>
    %38 = vector.multi_reduction <add>, %37, %cst_11 [0] : vector<16x1xf32> to vector<1xf32>
    %39 = vector.shape_cast %38 : vector<1xf32> to vector<1x1xf32>
    %cst_12 = arith.constant dense<0.000000e+00> : vector<1xf32>
    %40 = vector.multi_reduction <add>, %36, %cst_12 [0] : vector<16x1xf32> to vector<1xf32>
    %41 = vector.shape_cast %40 : vector<1xf32> to vector<1x1xf32>
    %c0_13 = arith.constant 0 : index
    %c0_14 = arith.constant 0 : index
    %c0_15 = arith.constant 0 : index
    %42 = vector.load %arg4[%c0_13, %c0_14, %c0_15] : memref<1x8x128xf32, #tpu.memory_space<vmem>>, vector<1x8x128xf32>
    %43 = vector.shape_cast %42 : vector<1x8x128xf32> to vector<8x128xf32>
    %44 = vector.shape_cast %39 : vector<1x1xf32> to vector<1x1xf32>
    %45 = vector.broadcast %44 : vector<1x1xf32> to vector<8x128xf32>
    %46 = arith.addf %43, %45 : vector<8x128xf32>
    %c0_16 = arith.constant 0 : index
    %c0_17 = arith.constant 0 : index
    %c0_18 = arith.constant 0 : index
    %47 = vector.load %arg4[%c0_16, %c0_17, %c0_18] : memref<1x8x128xf32, #tpu.memory_space<vmem>>, vector<1x8x128xf32>
    %48 = vector.shape_cast %47 : vector<1x8x128xf32> to vector<8x128xf32>
    %49 = vector.shape_cast %46 : vector<8x128xf32> to vector<1x8x128xf32>
    tpu.vector_store %arg4[%c0_16, %c0_17, %c0_18], %49 {strides = array<i32>} : memref<1x8x128xf32, #tpu.memory_space<vmem>>, vector<1x8x128xf32>,
    %c0_19 = arith.constant 0 : index
    %c0_20 = arith.constant 0 : index
    %c0_21 = arith.constant 0 : index
    %50 = vector.load %arg5[%c0_19, %c0_20, %c0_21] : memref<1x8x128xf32, #tpu.memory_space<vmem>>, vector<1x8x128xf32>
    %51 = vector.shape_cast %50 : vector<1x8x128xf32> to vector<8x128xf32>
    %52 = vector.shape_cast %41 : vector<1x1xf32> to vector<1x1xf32>
    %53 = vector.broadcast %52 : vector<1x1xf32> to vector<8x128xf32>
    %54 = arith.addf %51, %53 : vector<8x128xf32>
    %c0_22 = arith.constant 0 : index
    %c0_23 = arith.constant 0 : index
    %c0_24 = arith.constant 0 : index
    %55 = vector.load %arg5[%c0_22, %c0_23, %c0_24] : memref<1x8x128xf32, #tpu.memory_space<vmem>>, vector<1x8x128xf32>
    %56 = vector.shape_cast %55 : vector<1x8x128xf32> to vector<8x128xf32>
    %57 = vector.shape_cast %54 : vector<8x128xf32> to vector<1x8x128xf32>
    tpu.vector_store %arg5[%c0_22, %c0_23, %c0_24], %57 {strides = array<i32>} : memref<1x8x128xf32, #tpu.memory_space<vmem>>, vector<1x8x128xf32>,
    return
  }
  func.func @transform_0(%arg0: i32, %arg1: i32) -> (i32, i32, i32) {
    %c0_i32 = arith.constant 0 : i32
    %c0_i32_0 = arith.constant 0 : i32
    return %arg0, %arg1, %c0_i32 : i32, i32, i32
  }
  func.func @transform_1(%arg0: i32, %arg1: i32) -> (i32, i32) {
    %c0_i32 = arith.constant 0 : i32
    %c0_i32_0 = arith.constant 0 : i32
    return %arg1, %c0_i32 : i32, i32
  }
  func.func @transform_2(%arg0: i32, %arg1: i32) -> (i32, i32, i32) {
    %c0_i32 = arith.constant 0 : i32
    %c0_i32_0 = arith.constant 0 : i32
    %c0_i32_1 = arith.constant 0 : i32
    return %arg0, %c0_i32, %c0_i32_0 : i32, i32, i32
  }
  func.func @transform_3(%arg0: i32, %arg1: i32) -> (i32, i32, i32) {
    %c0_i32 = arith.constant 0 : i32
    %c0_i32_0 = arith.constant 0 : i32
    %c0_i32_1 = arith.constant 0 : i32
    return %arg0, %c0_i32, %c0_i32_0 : i32, i32, i32
  }
}

</mosaic_0001>

<bundles_post_ra>
// kernel: tpu_custom_call.1
= control target key start
LH: loop header
LB: loop body
LE: loop exit
PB: predicated region body
PF: predicated region fallthrough
CT: control target
= control target key end

     0   :  { %9 = vsyncpa [#allocation3], 0  ;;  %s971_s0 = inlined_call_operand.hbm [shape: f32[3,16,37], index: 0, kind: input, shape index: {}]   ;;  %s972_s1 = inlined_call_operand.vmem [shape: s32[16,1], index: 1, kind: input, shape index: {}]   ;;  %s973_s2 = inlined_call_operand.hbm [shape: f32[3,8,128], index: 2, kind: output, shape index: {0}]   ;;  %s974_s3 = inlined_call_operand.hbm [shape: f32[3,8,128], index: 3, kind: output, shape index: {1}]  }
   0x1   :  { %11 = vsyncpa [#allocation3 + $0x1], 0 }
   0x2   :  { %12 = vsyncpa [#allocation4], 0 }
   0x3   :  { %14 = vsyncpa [#allocation4 + $0x1], 0 }
   0x4   :  { %15 = vsyncpa [#allocation7], 0 }
   0x5   :  { %17 = vsyncpa [#allocation7 + $0x1], 0  ;;  %s786_s12 = smov 0   ;;  %s788_s13 = smov 0  }
   0x6   :  { %s790_s14 = smov 0   ;;  %s792_s15 = smov 0  }
   0x7   :  { %s794_s16 = smov 0   ;;  %s796_s17 = smov 0  }
   0x8 LB: > { %s515_s18 = sadd.s32 4294967295, %s757_s17   ;;  %s516_s19 = sadd.s32 4294967294, %s757_s17   ;;  %s757_s17 = sphi %s796_s17, %s23_s17   ;;  %s753_s16 = sphi %s794_s16, %s984_s16   ;;  %s749_s15 = sphi %s792_s15, %s983_s15   ;;  %s745_s14 = sphi %s790_s14, %s982_s14   ;;  %s741_s13 = sphi %s788_s13, %s981_s13   ;;  %s737_s12 = sphi %s786_s12, %s980_s12  }
   0x9   : > { %s35_s20 = sadd.s32 1, %s753_s16  ;;  %s44_s21 = sadd.s32 1, %s745_s14 }
   0xa   : > { %p37_p0 = scmp.ge.s32.totalorder %s35_s20, 3  ;;  %p51_p1 = scmp.ne.s32.totalorder %s745_s14, %s741_s13 }
   0xb   : > { %p52_p2 = scmp.eq.s32.totalorder %s757_s17, 0  ;;  %p57_p3 = scmp.ne.s32.totalorder %s741_s13, %s737_s12 }
   0xc   : > { %s986_s20 = smov (%p37_p0, %s35_s20), 0  ;;  %p58_p5 = scmp.eq.s32.totalorder %s515_s18, 0 }
   0xd   : > { %p827_p4 = por %p52_p2, %p51_p1  ;;  %s39_s23 = ssub.s32 %s753_s16, %s986_s20 }
   0xe   : > { %p107_p6 = scmp.eq.s32.totalorder %s515_s18, 2  ;;  %p42_p7 = scmp.eq.s32.totalorder %s39_s23, 0 }
   0xf   : > { %p833_p8 = por %p58_p5, %p57_p3  ;;  %p113_p10 = scmp.eq.s32.totalorder %s516_s19, 2 }
  0x10   : > { %p837_p9 = por %p107_p6, %p51_p1  ;;  %p555_p12 = scmp.lt.s32.totalorder %s757_s17, 3 }
  0x11   : > { %s842_s26 = scalar_select %p42_p7, %s745_s14, %s44_s21  }
  0x12   : > { %p844_p11 = por %p113_p10, %p57_p3  ;;  %s168_s28 = sand.u32 1, %s745_s14  }
  0x13   : > { %s520_s29 = sshll.u32 %s168_s28, 4  ;;  %s537_s30 = sshll.u32 %s753_s16, 8 }
  0x14   : > { %s180_s6 = scalar_lea.hbm %s971_s0, %s537_s30  ;;  %s172_s7 = scalar_lea.vmem [#allocation2], %s520_s29 }
  0x15   : > { %s181_s8 = sshll.u32 %s172_s7, 4  ;;  %p856_p13 = pnand %p555_p12, %p827_p4  ;;  %s182_s8 = int_to_ptr.vmem [resolvable:$true] %s181_s8 }
  0x16   : > { %p523_p0 = scmp.ge.s32.totalorder %s757_s17, 1  ;;  %s169_s10 = scalar_lea.sflag [#allocation3], %s168_s28 }
  0x17   : > { %p621_p1 = pneg %p856_p13  ;;  %s632_s11 = scalar_lea.vmem %s182_s8, 256 }
  0x18   : > { %p633_p2 = scmp.ne.s32.totalorder %s182_s8, %s632_s11  ;;  %s759_s18 = smov [#allocation2]  }
  0x19   : > { %s637_s19 = sshll.u32 %s759_s18, 4  ;;  %s638_s19 = int_to_ptr.vmem [resolvable:$false] %s637_s19 }
  0x1a   : > { %p635_p3 = pnand %p633_p2, %p621_p1  ;;  %s639_s21 = scalar_lea.vmem %s638_s19, 512 }
  0x1b   : > { %p640_p6 = scmp.lt.s32.totalorder %s182_s8, %s638_s19  ;;  %p641_p7 = scmp.lt.s32.totalorder %s639_s21, %s632_s11 }
  0x1c   : > { %p636_p5 = pneg %p635_p3 }
  0x1d   : > { %p642_p10 = por %p641_p7, %p640_p6 }
  0x1f   : > { %p643_p4 = pnand %p642_p10, %p636_p5 }
  0x21   : > { %646 = shalt.err (!%p643_p4)
}
  0x22   : > { %s760_s22 = smov 128   ;;  %s761_s23 = smov 8  }
  0x23   : > { %547 = dma.hbm_to_vmem [thread:$0]  (!%p856_p13), %s180_s6, 256, %s182_s8, %s169_s10, %s760_s22, %s760_s22, %s761_s23  }
  0x24   : > { %p189_p12 = scmp.lt.s32.totalorder %s757_s17, 4 }
  0x26   : > { %p190_p1 = pnand %p523_p0, %p189_p12 }
  0x27   : > { %s869_s28 = sand.u32 (!%p190_p1), 1, %s741_s13  }
  0x28   : > { %193 = sbr.rel (%p190_p1) target bundleno = 523 (0x20b), region = 28  ;;  %s524_s29 = sshll.u32 (!%p190_p1), %s869_s28, 4 }
  0x29   : > { %s196_s30 = scalar_lea.sflag (!%p190_p1), [#allocation3], %s869_s28  ;;  %s199_s4 = scalar_lea.vmem (!%p190_p1), [#allocation2], %s524_s29 }
  0x2d   : > { %724 = dma.done.wait (%p833_p8), %s196_s30, 256  }
  0x2e   : > { %726 = vsyncadd (%p833_p8), %s196_s30, 4294967040  ;;  %v762_v0 = vmov 0   ;;  %vm249_vm0 = vcmask 302080   ;;  %v245_v1 = vld [vmem:[%s199_s4] sm:$0xff]  ;;  %v246_v2 = vld [vmem:[%s199_s4 + $0x8] sm:$0xff]  ;;  %vm320_vm3 = vcmask 7168   ;;  %v272_v19 = vlaneseq }
  0x2f   : > { %609 = vset.pattern.permute.xlu1 %v762_v0  ;;  %610 = vset.pattern.permute.xlu0 %v762_v0  ;;  %v247_v3 = vld [vmem:[%s972_s1] sm:$0xff]  ;;  %v250_v4 = vsel %vm249_vm0, %v245_v1, -inf  ;;  %v248_v5 = vld [vmem:[%s972_s1 + $0x8] sm:$0xff]  ;;  %v253_v6 = vsel %vm249_vm0, %v246_v2, -inf  ;;  %v763_v12 = vmov 0.0   ;;  %s525_s24 = sshll.u32 %s869_s28, 3 }
  0x30   : > { %275 = vperm.xlu1 %609, %v247_v3   ;;  %251 = vmax.xlane.f32.xlu0 %v250_v4  ;;  %vm312_vm1 = vcmp.ne.s32.totalorder %v247_v3, 38  ;;  %vm313_vm2 = vcmp.ne.s32.totalorder %v248_v5, 38  ;;  %v273_v22 = vand.u32 127, %v272_v19  ;;  %s902_s9 = scalar_lea.vmem [#allocation6], %s525_s24  ;;  %s533_s10 = sshll.u32 %s749_s15, 7 }
  0x31   : > { %v885_v13 = vsel %vm312_vm1, 1.0, %v763_v12  ;;  %v887_v14 = vsel %vm313_vm2, 1.0, %v763_v12  ;;  %s385_s19 = scalar_lea.hbm %s974_s3, %s533_s10  ;;  %s387_s21 = sshll.u32 %s902_s9, 4  ;;  %s388_s21 = int_to_ptr.vmem [resolvable:$true] %s387_s21 }
  0x32   : > { %v330_v16 = vsel %vm320_vm3, %v885_v13, 0.0  ;;  %v331_v17 = vsel %vm320_vm3, %v887_v14, 0.0  ;;  %s361_s22 = scalar_lea.sflag [#allocation7], %s869_s28  ;;  %s647_s23 = scalar_lea.vmem %s388_s21, 128 }
  0x33   : > { %v332_v18 = vadd.f32 %v331_v17, %v330_v16  ;;  %p648_p8 = scmp.ne.s32.totalorder %s388_s21, %s647_s23  ;;  %s764_s29 = smov [#allocation6]  }
  0x34   : > { %278 = vperm.xlu1 %609, %v248_v5   ;;  %254 = vmax.xlane.f32.xlu0 %v253_v6  ;;  %s651_s30 = sshll.u32 %s764_s29, 4  ;;  %s652_s30 = int_to_ptr.vmem [resolvable:$false] %s651_s30 }
  0x35   : > { %v333_v21 = vrot.slane %v332_v18, 4  ;;  %p649_p13 = pnand %p648_p8, %p837_p9  ;;  %s653_s4 = scalar_lea.vmem %s652_s30, 256 }
  0x36   : > { %p654_p2 = scmp.lt.s32.totalorder %s388_s21, %s652_s30  ;;  %p655_p3 = scmp.lt.s32.totalorder %s653_s4, %s647_s23 }
  0x37   : > { %v334_v25 = vadd.f32 %v333_v21, %v332_v18  ;;  %p650_p0 = pneg %p649_p13 }
  0x38   : > { %p656_p5 = por %p655_p3, %p654_p2 }
  0x39   : > { %v335_v31 = vrot.slane %v334_v25, 2 }
  0x3a   : > { %p657_p6 = pnand %p656_p5, %p650_p0 }
  0x3b   : > { %v336_v35 = vadd.f32 %v335_v31, %v334_v25 }
  0x3d   : > { %v337_v38 = vrot.slane %v336_v35, 1 }
  0x3f   : > { %v338_v40 = vadd.f32 %v337_v38, %v336_v35 }
  0xab   : > { %v276_v20 = vpop.permute.xlu1 %275 }
  0xac   : > { %vm280_vm4 = vcmp.eq.s32.totalorder %v273_v22, %v276_v20 }
  0xad   : > { %v527_v30 = vsel %vm280_vm4, 1.0, %v763_v12 }
  0xaf   : > { %v279_v27 = vpop.permute.xlu1 %278 }
  0xb0   : > { %vm281_vm5 = vcmp.eq.s32.totalorder %v273_v22, %v279_v27 }
  0xb1   : > { %v528_v34 = vsel %vm281_vm5, 1.0, %v763_v12 }
  0xb9   : > { %v252_v7 = vpop.xlane.xlu0 %251 }
  0xba   : > { %v256_v8 = vsub.f32 %v245_v1, %v252_v7 }
  0xbc   : > { %v258_v9 = vmul.f32 1.442695, %v256_v8  ;;  %v294_v28 = vsel %vm249_vm0, %v256_v8, 0.0  ;;  %v286_v33 = vmul.f32 %v527_v30, %v256_v8 }
  0xbd   : > { %v255_v10 = vpop.xlane.xlu0 %254 }
  0xbe   : > { %611 = vpow2.f32 %v258_v9  ;;  %v257_v11 = vsub.f32 %v246_v2, %v255_v10  ;;  %v288_v36 = vsel %vm249_vm0, %v286_v33, 0.0 }
  0xc0   : > { %v260_v15 = vmul.f32 1.442695, %v257_v11  ;;  %v297_v32 = vsel %vm249_vm0, %v257_v11, 0.0  ;;  %v287_v37 = vmul.f32 %v528_v34, %v257_v11 }
  0xc2   : > { %613 = vpow2.f32 %v260_v15  ;;  %v291_v39 = vsel %vm249_vm0, %v287_v37, 0.0 }
  0xcb   : > { %v612_v23 = vpop.eup %611 }
  0xcc   : > { %v262_v24 = vsel %vm249_vm0, %v612_v23, 0.0 }
  0xcd   : > { %263 = vadd.xlane.f32.xlu0 %v262_v24 }
  0xcf   : > { %v614_v26 = vpop.eup %613 }
  0xd0   : > { %v265_v29 = vsel %vm249_vm0, %v614_v26, 0.0 }
  0xd1   : > { %295 = vadd.xlane.f32.xlu0 %v294_v28  ;;  %266 = vadd.xlane.f32.xlu1 %v265_v29 }
  0xd5   : > { %298 = vadd.xlane.f32.xlu0 %v297_v32 }
  0xd9   : > { %289 = vadd.xlane.f32.xlu0 %v288_v36 }
  0xdd   : > { %292 = vadd.xlane.f32.xlu0 %v291_v39 }
  0xe2   : > { %350 = vperm.xlu1 %609, %v338_v40  }
 0x156   : > { %v264_v41 = vpop.xlane.xlu0 %263 }
 0x157   : > { %615 = vlog2.f32 %v264_v41 }
 0x15a   : > { %v267_v42 = vpop.xlane.xlu1 %266  ;;  %v296_v43 = vpop.xlane.xlu0 %295 }
 0x15b   : > { %617 = vlog2.f32 %v267_v42  ;;  %v302_v49 = vmul.f32 0.027027028, %v296_v43 }
 0x15e   : > { %v351_v44 = vpop.permute.xlu1 %350  ;;  %v299_v45 = vpop.xlane.xlu0 %298 }
 0x15f   : > { %354 = vst [vmem:[%s902_s9] sm:$0xff] %v351_v44  ;;  %v303_v53 = vmul.f32 0.027027028, %v299_v45 }
 0x162   : > { %v290_v47 = vpop.xlane.xlu0 %289 }
 0x164   : > { %v616_v46 = vpop.eup %615 }
 0x165   : > { %v269_v48 = vmul.f32 0.6931472, %v616_v46 }
 0x166   : > { %v293_v57 = vpop.xlane.xlu0 %292 }
 0x167   : > { %v304_v50 = vsub.f32 %v269_v48, %v302_v49  ;;  %v300_v51 = vsub.f32 %v269_v48, %v290_v47 }
 0x168   : > { %v618_v52 = vpop.eup %617 }
 0x169   : > { %v271_v54 = vmul.f32 0.6931472, %v618_v52  ;;  %v308_v55 = vmul.f32 0.1, %v304_v50  ;;  %v306_v56 = vmul.f32 0.9, %v300_v51 }
 0x16b   : > { %v305_v58 = vsub.f32 %v271_v54, %v303_v53  ;;  %v310_v59 = vadd.f32 %v308_v55, %v306_v56  ;;  %v301_v60 = vsub.f32 %v271_v54, %v293_v57 }
 0x16d   : > { %v309_v61 = vmul.f32 0.1, %v305_v58  ;;  %v307_v62 = vmul.f32 0.9, %v301_v60  ;;  %v318_v63 = vmul.f32 %v885_v13, %v310_v59 }
 0x16f   : > { %v311_v0 = vadd.f32 %v309_v61, %v307_v62  ;;  %v321_v2 = vsel %vm320_vm3, %v318_v63, 0.0 }
 0x171   : > { %v319_v1 = vmul.f32 %v887_v14, %v311_v0 }
 0x173   : > { %v322_v3 = vsel %vm320_vm3, %v319_v1, 0.0 }
 0x174   : > { %v323_v4 = vadd.f32 %v322_v3, %v321_v2 }
 0x176   : > { %v324_v5 = vrot.slane %v323_v4, 4 }
 0x178   : > { %v325_v6 = vadd.f32 %v324_v5, %v323_v4 }
 0x17a   : > { %v326_v7 = vrot.slane %v325_v6, 2 }
 0x17c   : > { %v327_v8 = vadd.f32 %v326_v7, %v325_v6 }
 0x17e   : > { %v328_v9 = vrot.slane %v327_v8, 1 }
 0x180   : > { %v329_v10 = vadd.f32 %v328_v9, %v327_v8 }
 0x182   : > { %342 = vperm.xlu0 %610, %v329_v10  }
 0x183   : > { %660 = shalt.err (!%p657_p6)
}
 0x184   : > { %s661_s5 = scalar_lea.hbm %s385_s19, 128  ;;  %s665_s8 = scalar_lea.hbm %s974_s3, 384 }
 0x185   : > { %p662_p7 = scmp.ne.s32.totalorder %s385_s19, %s661_s5  ;;  %p666_p12 = scmp.lt.s32.totalorder %s385_s19, %s974_s3 }
 0x186   : > { %p667_p1 = scmp.lt.s32.totalorder %s665_s8, %s661_s5 }
 0x187   : > { %p663_p10 = pnand %p662_p7, %p837_p9 }
 0x188   : > { %p668_p8 = por %p667_p1, %p666_p12 }
 0x189   : > { %p664_p4 = pneg %p663_p10 }
 0x18b   : > { %p669_p13 = pnand %p668_p8, %p664_p4 }
 0x18d   : > { %672 = shalt.err (!%p669_p13)
}
 0x18e   : > { %541 = dma.vmem_to_hbm [thread:$0]  (%p837_p9), %s388_s21, 128, %s385_s19, %s361_s22  }
 0x18f   : > { %s224_s18 = scalar_lea.vmem [#allocation5], %s525_s24  ;;  %s372_s4 = scalar_lea.hbm %s973_s2, %s533_s10 }
 0x190   : > { %s374_s23 = sshll.u32 %s224_s18, 4  ;;  %s356_s5 = scalar_lea.sflag [#allocation4], %s869_s28  ;;  %s375_s23 = int_to_ptr.vmem [resolvable:$true] %s374_s23 }
 0x191   : > { %s673_s6 = scalar_lea.vmem %s375_s23, 128  ;;  %s765_s7 = smov [#allocation5]  }
 0x192   : > { %p674_p0 = scmp.ne.s32.totalorder %s375_s23, %s673_s6  ;;  %s677_s8 = sshll.u32 %s765_s7, 4  ;;  %s678_s8 = int_to_ptr.vmem [resolvable:$false] %s677_s8 }
 0x193   : > { %s679_s19 = scalar_lea.vmem %s678_s8, 256  ;;  %p680_p5 = scmp.lt.s32.totalorder %s375_s23, %s678_s8 }
 0x194   : > { %p675_p2 = pnand %p674_p0, %p837_p9  ;;  %p681_p6 = scmp.lt.s32.totalorder %s679_s19, %s673_s6 }
 0x196   : > { %p676_p3 = pneg %p675_p2  ;;  %p682_p7 = por %p681_p6, %p680_p5 }
 0x198   : > { %p683_p10 = pnand %p682_p7, %p676_p3 }
 0x1fd   : > { %v343_v11 = vpop.permute.xlu0 %342 }
 0x1fe   : > { %346 = vst [vmem:[%s224_s18] sm:$0xff] %v343_v11 }
 0x1ff   : > { %686 = shalt.err (!%p683_p10)
}
 0x200   : > { %s687_s15 = scalar_lea.hbm %s372_s4, 128  ;;  %s691_s10 = scalar_lea.hbm %s973_s2, 384 }
 0x201   : > { %p688_p4 = scmp.ne.s32.totalorder %s372_s4, %s687_s15  ;;  %p692_p8 = scmp.lt.s32.totalorder %s372_s4, %s973_s2 }
 0x202   : > { %p693_p13 = scmp.lt.s32.totalorder %s691_s10, %s687_s15 }
 0x203   : > { %p689_p12 = pnand %p688_p4, %p837_p9 }
 0x204   : > { %p694_p0 = por %p693_p13, %p692_p8 }
 0x205   : > { %p690_p1 = pneg %p689_p12 }
 0x207   : > { %p695_p2 = pnand %p694_p0, %p690_p1 }
 0x209   : > { %698 = shalt.err (!%p695_p2)
}
 0x20a   : > { %540 = dma.vmem_to_hbm [thread:$0]  (%p837_p9), %s375_s23, 128, %s372_s4, %s356_s5  }
 0x20b PF: > { %p556_p3 = scmp.ge.s32.totalorder %s757_s17, 2  ;;  %s399_s9 = sand.u32 1, %s737_s12  }
 0x20c   : > { %s400_s11 = scalar_lea.sflag [#allocation4], %s399_s9 }
 0x20d   : > { %p549_p5 = pnand %p556_p3, %p844_p11 }
 0x20f   : > { %p550_p6 = pneg %p549_p5 }
 0x211   : > { %728 = dma.done.wait (%p550_p6), %s400_s11, 128  }
 0x212   : > { %730 = vsyncadd (%p550_p6), %s400_s11, 4294967168  ;;  %s409_s18 = scalar_lea.sflag [#allocation7], %s399_s9 }
 0x213   : > { %732 = dma.done.wait (%p550_p6), %s409_s18, 128  }
 0x214   : > { %734 = vsyncadd (%p550_p6), %s409_s18, 4294967168  ;;  %s23_s17 = sadd.s32 1, %s757_s17   ;;  %s980_s12 = smov %s741_s13 }
 0x215   : > { %p20_p7 = scmp.ge.s32.totalorder %s23_s17, 5   ;;  %s981_s13 = smov %s745_s14 }
 0x216   : > { %s982_s14 = smov %s842_s26  ;;  %s983_s15 = smov %s753_s16 }
 0x217   : > { %s984_s16 = smov %s986_s20  ;;  %22 = sbr.rel (!%p20_p7) target bundleno = 8 (0x8), region = 97 }
 0x21c   :  { %414 = vsyncpa [#allocation3], 1 }
 0x21d   :  { %416 = vsyncpa [#allocation3 + $0x1], 1 }
 0x21e   :  { %417 = vsyncpa [#allocation4], 1 }
 0x21f   :  { %419 = vsyncpa [#allocation4 + $0x1], 1 }
 0x220   :  { %420 = vsyncpa [#allocation7], 1 }
 0x221   :  { %422 = vsyncpa [#allocation7 + $0x1], 1 }

</bundles_post_ra>
